<compile_context>
chip_gen: v5e
topology: v5e:2x2
jax: 0.10.0
libtpu: 0.0.40
codegen_flags: <defaults>
</compile_context>

<pallas_src>
import functools

import numpy as np

import jax
import jax.numpy as jnp
from jax.experimental import pallas as pl
from jax.experimental.pallas import tpu as pltpu


VGG11_CFG = [64, "M", 128, "M", 256, 256, "M", 512, 512, "M", 512, 512, "M"]

_VMEM_LIMIT = 32 * 1024 * 1024   # safe on v5e/v6e/v7x; above v5e's 16 MiB default


def _round_up(x, m):
    return ((x + m - 1) // m) * m


# ---------------------------------------------------------------------------
# Pallas kernels
# ---------------------------------------------------------------------------

def _matmul_bias_kernel_1k(a_ref, b_ref, bias_ref, o_ref, *, relu):
    """Single-K-block matmul (conv path): bf16 MXU, f32 math, fused bias+ReLU."""
    out = jnp.dot(a_ref[...], b_ref[...], preferred_element_type=jnp.float32)
    out = out + bias_ref[...]
    if relu:
        out = jnp.maximum(out, 0.0)
    o_ref[...] = out.astype(o_ref.dtype)


def _matmul_bias_kernel_acc(a_ref, b_ref, bias_ref, o_ref, acc_ref, *, relu):
    """K-tiled matmul (fc1 weight streaming): f32 VMEM accumulator,
    bias folded into the k==0 init, ReLU fused into the last-k epilogue."""
    @pl.when(pl.program_id(2) == 0)
    def _():
        acc_ref[...] = jnp.broadcast_to(bias_ref[...], acc_ref.shape)

    acc_ref[...] += jnp.dot(a_ref[...], b_ref[...],
                            preferred_element_type=jnp.float32)

    @pl.when(pl.program_id(2) == pl.num_programs(2) - 1)
    def _():
        out = acc_ref[...]
        if relu:
            out = jnp.maximum(out, 0.0)
        o_ref[...] = out.astype(o_ref.dtype)


def _maxpool2x2_kernel(x_ref, o_ref):
    """2x2/2 max pool on a (tile_r, 2, Wo, 2*C) block -> (tile_r, Wo, C).
    Row pair via axis-1 index, column pair via lane-dim halves (C-aligned)."""
    blk = x_ref[...]
    m = jnp.maximum(blk[:, 0], blk[:, 1])          # vertical (row-pair) max
    c = o_ref.shape[-1]
    o_ref[...] = jnp.maximum(m[..., :c], m[..., c:])   # horizontal (col-pair) max


def _tail_kernel(x_ref, w2_ref, b2_ref, w3_ref, b3_ref, o_ref):
    """Fused classifier tail: relu(x @ W2 + b2) @ W3 + b3, all VMEM-resident."""
    h = jnp.dot(x_ref[...], w2_ref[...], preferred_element_type=jnp.float32)
    h = jnp.maximum(h + b2_ref[...], 0.0)
    o = jnp.dot(h.astype(jnp.bfloat16), w3_ref[...],
                preferred_element_type=jnp.float32)
    o_ref[...] = o + b3_ref[...]


# ---------------------------------------------------------------------------
# Pallas wrappers
# ---------------------------------------------------------------------------

def matmul_bias_act(a, layer, *, relu, out_dtype, keep_padded_rows=False):
    """(M, K) @ (K, Np) + bias with fused optional ReLU.

    Weights/biases were padded + cast to bf16 ONCE at param-prep time.
    K is never padded at call time (convs use one full-K block; fc1's K is a
    multiple of its tk), so the only per-call glue is an optional row pad.
    """
    M, K = a.shape
    assert a.dtype == jnp.bfloat16
    w, bias = layer["w"], layer["b"]
    Kp, Np = w.shape
    tn, tk = layer["tn"], layer["tk"]
    assert K == Kp == layer["k"], (K, Kp, layer["k"])
    assert Kp % tk == 0 and Np % tn == 0

    tm = 256 if M >= 256 else _round_up(M, 8)
    Mp = _round_up(M, tm)
    a_p = a if Mp == M else jnp.pad(a, ((0, Mp - M), (0, 0)))

    kt = Kp // tk
    out_shape = jax.ShapeDtypeStruct((Mp, Np), out_dtype)

    if kt == 1:
        out = pl.pallas_call(
            functools.partial(_matmul_bias_kernel_1k, relu=relu),
            out_shape=out_shape,
            grid=(Mp // tm, Np // tn),
            in_specs=[
                pl.BlockSpec((tm, tk), lambda i, j: (i, 0)),
                pl.BlockSpec((tk, tn), lambda i, j: (0, j)),
                pl.BlockSpec((1, tn), lambda i, j: (0, j)),
            ],
            out_specs=pl.BlockSpec((tm, tn), lambda i, j: (i, j)),
            compiler_params=pltpu.CompilerParams(
                dimension_semantics=("parallel", "parallel"),
                vmem_limit_bytes=_VMEM_LIMIT),
        )(a_p, w, bias)
    else:
        out = pl.pallas_call(
            functools.partial(_matmul_bias_kernel_acc, relu=relu),
            out_shape=out_shape,
            grid=(Mp // tm, Np // tn, kt),
            in_specs=[
                pl.BlockSpec((tm, tk), lambda i, j, k: (i, k)),
                pl.BlockSpec((tk, tn), lambda i, j, k: (k, j)),
                pl.BlockSpec((1, tn), lambda i, j, k: (0, j)),
            ],
            out_specs=pl.BlockSpec((tm, tn), lambda i, j, k: (i, j)),
            scratch_shapes=[pltpu.VMEM((tm, tn), jnp.float32)],
            compiler_params=pltpu.CompilerParams(
                dimension_semantics=("parallel", "parallel", "arbitrary"),
                vmem_limit_bytes=_VMEM_LIMIT),
        )(a_p, w, bias)

    rows = Mp if keep_padded_rows else M
    ncols = layer["n"]
    if rows != Mp or ncols != Np:
        out = out[:rows, :ncols]
    return out


def _pick_pool_rows(rows, row_bytes, budget=512 * 1024):
    """Largest divisor of `rows` whose block fits `budget`; prefer >=2 blocks."""
    divs = [d for d in range(1, rows + 1) if rows % d == 0]
    fitting = [d for d in divs if d * row_bytes <= budget]
    if not fitting:
        return 1
    multi = [d for d in fitting if rows // d >= 2]
    return max(multi) if multi else max(fitting)


def maxpool2x2(x):
    """MaxPool2d(kernel_size=2, stride=2) on an NHWC (bf16) feature map.

    The input is viewed as (B*Ho, 2, Wo, 2*C) via a free contiguous reshape
    (no strided slabs in HBM).  The kernel tiles over output rows with
    ~512 KiB blocks and a lane-dense (C >= 128) output."""
    B, H, W, C = x.shape
    Ho, Wo = H // 2, W // 2
    R = B * Ho
    xr = x.reshape(R, 2, Wo, 2 * C)
    row_bytes = 2 * Wo * 2 * C * x.dtype.itemsize
    tile_r = _pick_pool_rows(R, row_bytes)

    out = pl.pallas_call(
        _maxpool2x2_kernel,
        out_shape=jax.ShapeDtypeStruct((R, Wo, C), x.dtype),
        grid=(R // tile_r,),
        in_specs=[pl.BlockSpec((tile_r, 2, Wo, 2 * C), lambda i: (i, 0, 0, 0))],
        out_specs=pl.BlockSpec((tile_r, Wo, C), lambda i: (i, 0, 0)),
        compiler_params=pltpu.CompilerParams(
            dimension_semantics=("parallel",)),
    )(xr)
    return out.reshape(B, Ho, Wo, C)


def fused_tail(x_bf, params):
    """Linear(2048,512)+ReLU+Linear(512,nc) in one VMEM-resident pallas_call.
    `x_bf` is the row-padded bf16 output of fc1 (consumed with no extra cast).
    # TODO(synk): grid=(1,) leaves v7x's second TensorCore idle for this tiny call."""
    Mp = x_bf.shape[0]
    w2, b2 = params["fc2_w"], params["fc2_b"]
    w3, b3 = params["fc3_w"], params["fc3_b"]
    np3 = w3.shape[1]
    return pl.pallas_call(
        _tail_kernel,
        out_shape=jax.ShapeDtypeStruct((Mp, np3), jnp.float32),
        grid=(1,),
        in_specs=[
            pl.BlockSpec(x_bf.shape, lambda i: (0, 0)),
            pl.BlockSpec(w2.shape, lambda i: (0, 0)),
            pl.BlockSpec(b2.shape, lambda i: (0, 0)),
            pl.BlockSpec(w3.shape, lambda i: (0, 0)),
            pl.BlockSpec(b3.shape, lambda i: (0, 0)),
        ],
        out_specs=pl.BlockSpec((Mp, np3), lambda i: (0, 0)),
    )(x_bf, w2, b2, w3, b3)


# ---------------------------------------------------------------------------
# Glue: im2col, conv wrapper, adaptive avg pool
# ---------------------------------------------------------------------------

def im2col(x, kh, kw, stride, pad):
    """NHWC (bf16) -> (B*Ho*Wo, kh*kw*C) patch matrix (window-major, channel-minor).
    # TODO(synk): implicit GEMM (fusing im2col into the matmul LHS index_map)
    # would remove this kh*kw-duplicated patch matrix from HBM entirely."""
    B, H, W, C = x.shape
    xp = jnp.pad(x, ((0, 0), (pad, pad), (pad, pad), (0, 0)))
    Hp, Wp = H + 2 * pad, W + 2 * pad
    ho = (Hp - kh) // stride + 1
    wo = (Wp - kw) // stride + 1
    cols = []
    for i in range(kh):
        for j in range(kw):
            cols.append(xp[:, i:i + stride * (ho - 1) + 1:stride,
                           j:j + stride * (wo - 1) + 1:stride, :])
    patches = jnp.stack(cols, axis=3)            # (B, ho, wo, kh*kw, C)
    return patches.reshape(B * ho * wo, kh * kw * C), ho, wo


def conv2d_relu(x, layer):
    """Conv2d(3x3, pad=1) + ReLU via im2col + Pallas matmul (bf16 in/out)."""
    B = x.shape[0]
    patches, ho, wo = im2col(x, 3, 3, 1, 1)
    out = matmul_bias_act(patches, layer, relu=True, out_dtype=jnp.bfloat16)
    return out.reshape(B, ho, wo, -1)


def _adaptive_pool_matrix(in_size, out_size):
    a = np.zeros((out_size, in_size), np.float32)
    for i in range(out_size):
        s = (i * in_size) // out_size
        e = -(-((i + 1) * in_size) // out_size)
        a[i, s:e] = 1.0 / (e - s)
    return jnp.asarray(a)


def adaptive_avg_pool(x, out_h, out_w):
    """AdaptiveAvgPool2d((out_h,out_w)) as two precomputed-matrix einsums.
    # TODO(synk): stays in plain JAX — result is a tiny (B,7,7,C) tensor."""
    B, H, W, C = x.shape
    ah = _adaptive_pool_matrix(H, out_h)            # (out_h, H)
    aw = _adaptive_pool_matrix(W, out_w)            # (out_w, W)
    y = jnp.einsum("ih,bhwc->biwc", ah, x.astype(jnp.float32))
    return jnp.einsum("jw,biwc->bijc", aw, y)       # (B, out_h, out_w, C) f32


# ---------------------------------------------------------------------------
# Parameter preparation (padding + bf16 cast hoisted out of forward)
# ---------------------------------------------------------------------------

def _prep_conv(w, b):
    """w: (kh*kw, Cin_kept, Cout) f32 ; b: (Cout,) f32.
    Weight -> (K, Np) bf16 with Cout padded to a 128 multiple; the padded
    output channels are KEPT downstream (they are exactly zero), so the conv
    path never slices its output.  tk = full K (single MXU K block)."""
    kk, cin, cout = w.shape
    K = kk * cin
    Np = _round_up(cout, 128)
    w2 = jnp.pad(w.reshape(K, cout), ((0, 0), (0, Np - cout))).astype(jnp.bfloat16)
    b2 = jnp.pad(b, (0, Np - cout)).reshape(1, Np).astype(jnp.float32)
    return {"w": w2, "b": b2, "tk": K, "tn": min(256, Np), "k": K, "n": Np}


def _prep_fc(w, b, *, tk, tn):
    """Pad an FC weight to (K, Np), cast to bf16; bias to f32 (1, Np)."""
    K, N = w.shape
    Np = _round_up(N, 128)
    assert K % tk == 0 and Np % tn == 0, (K, tk, Np, tn)
    w2 = jnp.pad(w, ((0, 0), (0, Np - N))).astype(jnp.bfloat16)
    b2 = jnp.pad(b, (0, Np - N)).reshape(1, Np).astype(jnp.float32)
    return {"w": w2, "b": b2, "tk": tk, "tn": tn, "k": K, "n": Np}


def init_params(key, num_classes=4, in_channels=1):
    keys = iter(jax.random.split(key, 32))

    def rnd(shape, scale):
        return jax.random.normal(next(keys), shape, jnp.float32) * scale

    params = {"num_classes": num_classes}
    cin = in_channels        # logical input channels of the next conv
    cin_kept = in_channels   # channels physically present in the activation
    conv_i = 0
    for v in VGG11_CFG:
        if v == "M":
            continue
        fan_out = 3 * 3 * v
        w = rnd((3 * 3, cin, v), (2.0 / fan_out) ** 0.5)   # kaiming_normal, fan_out
        if cin_kept > cin:                                  # zero rows for padded channels
            w = jnp.pad(w, ((0, 0), (0, cin_kept - cin), (0, 0)))
        b = jnp.zeros((v,), jnp.float32)
        layer = _prep_conv(w, b)
        params[f"conv{conv_i}"] = layer
        cin, cin_kept = v, layer["n"]
        conv_i += 1

    # classifier: Linear(512*7*7,2048) -> ReLU -> Dropout ->
    #             Linear(2048,512) -> ReLU -> Linear(512,num_classes)
    params["fc1"] = _prep_fc(rnd((512 * 7 * 7, 2048), 0.01),
                             jnp.zeros((2048,), jnp.float32), tk=1792, tn=1024)
    w2 = rnd((2048, 512), 0.01)
    w3 = rnd((512, num_classes), 0.01)
    np3 = _round_up(num_classes, 128)
    params["fc2_w"] = w2.astype(jnp.bfloat16)
    params["fc2_b"] = jnp.zeros((1, 512), jnp.float32)
    params["fc3_w"] = jnp.pad(w3, ((0, 0), (0, np3 - num_classes))).astype(jnp.bfloat16)
    params["fc3_b"] = jnp.zeros((1, np3), jnp.float32)
    return params


# ---------------------------------------------------------------------------
# Model forward
# ---------------------------------------------------------------------------

def forward(params, x):
    # x: (B, Cin, H, W) NCHW f32 -> NHWC bf16 internally (cast once).
    B = x.shape[0]
    x = jnp.transpose(x, (0, 2, 3, 1)).astype(jnp.bfloat16)

    # features (VGG11-style: conv3x3 pad1 + ReLU, MaxPool2d(2,2))
    conv_i = 0
    for v in VGG11_CFG:
        if v == "M":
            x = maxpool2x2(x)
        else:
            x = conv2d_relu(x, params[f"conv{conv_i}"])
            conv_i += 1

    # avgpool + flatten in PyTorch's NCHW (channel-major) order
    x = adaptive_avg_pool(x, 7, 7)                       # (B, 7, 7, 512) f32
    x = jnp.transpose(x, (0, 3, 1, 2)).reshape(B, 512 * 7 * 7)
    x = x.astype(jnp.bfloat16)

    # classifier: fc1+ReLU (Dropout eval => identity), fused fc2+ReLU+fc3
    x = matmul_bias_act(x, params["fc1"], relu=True,
                        out_dtype=jnp.bfloat16, keep_padded_rows=True)
    out = fused_tail(x, params)                          # (Mp, np3) f32
    return out[:B, :params["num_classes"]]


if __name__ == "__main__":
    key = jax.random.PRNGKey(0)
    kp, kx = jax.random.split(key)
    params = init_params(kp, num_classes=4, in_channels=1)

    # 64x64 input survives the 5 maxpools (64->32->16->8->4->2) before the
    # adaptive avg pool brings it back up to 7x7, like the PyTorch module.
    x = jax.random.normal(kx, (2, 1, 64, 64), jnp.float32)

    out = forward(params, x)
    out = jax.block_until_ready(out)
    assert out.shape == (2, 4), out.shape
    print("KERNEL_OK")
</pallas_src>

<mosaic_0001>
module attributes {stable_mosaic.version = 11 : i64} {
  func.func @_matmul_bias_kernel_1k(%arg0: i32, %arg1: i32, %arg2: memref<256x9xbf16, #tpu.memory_space<vmem>>, %arg3: memref<9x128xbf16, #tpu.memory_space<vmem>>, %arg4: memref<1x128xf32, #tpu.memory_space<vmem>>, %arg5: memref<256x128xbf16, #tpu.memory_space<vmem>>) attributes {dimension_semantics = [#tpu.dimension_semantics<parallel>, #tpu.dimension_semantics<parallel>], iteration_bounds = array<i64: 32, 1>, scalar_prefetch = 0 : i64, scratch_operands = 0 : i64, tpu.core_type = #tpu.core_type<tc>, window_params = [{transform_indices = @transform_0, window_bounds = array<i64: 256, 9>}, {transform_indices = @transform_1, window_bounds = array<i64: 9, 128>}, {transform_indices = @transform_2, window_bounds = array<i64: 1, 128>}, {transform_indices = @transform_3, window_bounds = array<i64: 256, 128>}]} {
    %c0 = arith.constant 0 : index
    %c0_0 = arith.constant 0 : index
    %0 = vector.load %arg2[%c0, %c0_0] : memref<256x9xbf16, #tpu.memory_space<vmem>>, vector<256x9xbf16>
    %c0_1 = arith.constant 0 : index
    %c0_2 = arith.constant 0 : index
    %1 = vector.load %arg3[%c0_1, %c0_2] : memref<9x128xbf16, #tpu.memory_space<vmem>>, vector<9x128xbf16>
    %cst = arith.constant dense<0.000000e+00> : vector<256x128xf32>
    %2 = tpu.matmul %0, %1, %cst {dimension_numbers = #tpu.dot_dimension_numbers<[1], [0], [0], [1], [0, 0, 1, 1], [], []>} : vector<256x9xbf16>, vector<9x128xbf16>, vector<256x128xf32> -> vector<256x128xf32>
    %c0_3 = arith.constant 0 : index
    %c0_4 = arith.constant 0 : index
    %3 = vector.load %arg4[%c0_3, %c0_4] : memref<1x128xf32, #tpu.memory_space<vmem>>, vector<1x128xf32>
    %4 = vector.broadcast %3 : vector<1x128xf32> to vector<256x128xf32>
    %5 = arith.addf %2, %4 : vector<256x128xf32>
    %cst_5 = arith.constant 0.000000e+00 : f32
    %6 = vector.broadcast %cst_5 : f32 to vector<256x128xf32>
    %7 = arith.maximumf %5, %6 : vector<256x128xf32>
    %8 = arith.truncf %7 : vector<256x128xf32> to vector<256x128xbf16>
    %c0_6 = arith.constant 0 : index
    %c0_7 = arith.constant 0 : index
    %9 = vector.load %arg5[%c0_6, %c0_7] : memref<256x128xbf16, #tpu.memory_space<vmem>>, vector<256x128xbf16>
    tpu.vector_store %arg5[%c0_6, %c0_7], %8 {strides = array<i32>} : memref<256x128xbf16, #tpu.memory_space<vmem>>, vector<256x128xbf16>,
    return
  }
  func.func @transform_0(%arg0: i32, %arg1: i32) -> (i32, i32) {
    %c0_i32 = arith.constant 0 : i32
    %c0_i32_0 = arith.constant 0 : i32
    return %arg0, %c0_i32 : i32, i32
  }
  func.func @transform_1(%arg0: i32, %arg1: i32) -> (i32, i32) {
    %c0_i32 = arith.constant 0 : i32
    %c0_i32_0 = arith.constant 0 : i32
    return %c0_i32, %arg1 : i32, i32
  }
  func.func @transform_2(%arg0: i32, %arg1: i32) -> (i32, i32) {
    %c0_i32 = arith.constant 0 : i32
    %c0_i32_0 = arith.constant 0 : i32
    return %c0_i32, %arg1 : i32, i32
  }
  func.func @transform_3(%arg0: i32, %arg1: i32) -> (i32, i32) {
    %c0_i32 = arith.constant 0 : i32
    return %arg0, %arg1 : i32, i32
  }
}

</mosaic_0001>

<bundles_post_ra>
// kernel: tpu_custom_call.1
= control target key start
LH: loop header
LB: loop body
LE: loop exit
PB: predicated region body
PF: predicated region fallthrough
CT: control target
= control target key end

     0   :  { %8 = vsyncpa [#allocation3], 0  ;;  %s1253_s0 = inlined_call_operand.vmem [shape: bf16[8192,9], index: 0, kind: input, shape index: {}]   ;;  %s1254_s1 = inlined_call_operand.vmem [shape: bf16[9,128], index: 1, kind: input, shape index: {}]   ;;  %s1255_s2 = inlined_call_operand.vmem [shape: f32[1,128], index: 2, kind: input, shape index: {}]   ;;  %s1256_s3 = inlined_call_operand.hbm [shape: bf16[8192,128], index: 3, kind: output, shape index: {}]  }
   0x1   :  { %10 = vsyncpa [#allocation3 + $0x1], 0  ;;  %s1075_s12 = smov 0   ;;  %s1077_s13 = smov 0  }
   0x2   :  { %s1079_s14 = smov 0   ;;  %s1081_s15 = smov 0  }
   0x3   :  { %s1083_s16 = smov 0   ;;  %s1085_s17 = smov 0  }
   0x4 LB: > { %s698_s18 = sadd.s32 4294967295, %s1050_s17   ;;  %s699_s19 = sadd.s32 4294967294, %s1050_s17   ;;  %s1050_s17 = sphi %s1085_s17, %s16_s17   ;;  %s1046_s16 = sphi %s1083_s16, %s1263_s16   ;;  %s1042_s15 = sphi %s1081_s15, %s1262_s15   ;;  %s1038_s14 = sphi %s1079_s14, %s1261_s14   ;;  %s1034_s13 = sphi %s1077_s13, %s1260_s13   ;;  %s1030_s12 = sphi %s1075_s12, %s1259_s12  }
   0x5   : > { %s28_s20 = sadd.s32 1, %s1046_s16  ;;  %s115_s21 = sadd.s32 1, %s1038_s14 }
   0x6   : > { %p30_p0 = scmp.ge.s32.totalorder %s28_s20, 32  ;;  %p125_p1 = scmp.ne.s32.totalorder %s1038_s14, %s1034_s13 }
   0x7   : > { %p126_p2 = scmp.eq.s32.totalorder %s698_s18, 31  ;;  %p131_p3 = scmp.ne.s32.totalorder %s1034_s13, %s1030_s12 }
   0x8   : > { %s1265_s20 = smov (%p30_p0, %s28_s20), 0  ;;  %p132_p5 = scmp.eq.s32.totalorder %s699_s19, 31 }
   0x9   : > { %p1115_p4 = por %p126_p2, %p125_p1  ;;  %s110_s23 = ssub.s32 %s1046_s16, %s1265_s20 }
   0xa   : > { %p704_p6 = scmp.ge.s32.totalorder %s1050_s17, 1  ;;  %p113_p7 = scmp.eq.s32.totalorder %s110_s23, 0 }
   0xb   : > { %p1122_p8 = por %p132_p5, %p131_p3  ;;  %p172_p9 = scmp.lt.s32.totalorder %s1050_s17, 33 }
   0xc   : > { %s1128_s25 = scalar_select %p113_p7, %s1038_s14, %s115_s21  }
   0xd   : > { %p173_p10 = pnand %p704_p6, %p172_p9 }
   0xe   : > { %s706_s30 = sshll.u32 (!%p173_p10), %s1042_s15, 5  ;;  %s200_s10 = sand.u32 (!%p173_p10), 1, %s1034_s13  }
   0xf   : > { %176 = sbr.rel (%p173_p10) target bundleno = 229 (0xe5), region = 32  ;;  %p204_p11 = scmp.lt.s32.totalorder (!%p173_p10), %s706_s30, 1023 }
  0x10   : > { %s705_s11 = sshll.u32 (!%p173_p10), %s200_s10, 7  ;;  %s814_s19 = sshll.u32 (!%p173_p10), %s1042_s15, 7 }
  0x11   : > { %s1170_s18 = scalar_lea.vmem (!%p173_p10), [#allocation2], %s705_s11  ;;  %s595_s26 = scalar_lea.hbm (!%p173_p10), %s1256_s3, %s814_s19 }
  0x12   : > { %s596_s15 = sshll.u32 (!%p173_p10), %s1170_s18, 4  ;;  %s598_s27 = sshll.u32 (!%p173_p10), %s595_s26, 4  ;;  %s597_s15 = int_to_ptr.vmem [resolvable:$true] %s596_s15  ;;  %s599_s27 = int_to_ptr.hbm [resolvable:$true] %s598_s27 }
  0x13   : > { %s583_s28 = scalar_lea.sflag (!%p173_p10), [#allocation3], %s200_s10  ;;  %s986_s29 = sshra.s32 (!%p173_p10), %s599_s27, 4  ;;  %s987_s29 = int_to_ptr.hbm [resolvable:$true] %s986_s29 }
  0x14   : > { %v774_v0 = vld [vmem:[%s1254_s1] sm:$0xf]  ;;  %v813_v1 = vld [vmem:[%s1254_s1] sm:$0x10]  ;;  %vm390_vm0 = vcmask 1043456   ;;  %vm391_vm1 = vcmask 1044480   ;;  %p993_p1 = scmp.lt.s32.totalorder %s987_s29, %s1256_s3 }
  0x15   : > { %v775_v2 = vor.u32 %v813_v1, %v774_v0  ;;  %v1052_v3 = vmov 65535   ;;  %s1267_s30 = smov (!%p204_p11, %s706_s30), 1023  ;;  %vm341_vm2 = vcmask 72704   ;;  %v1159_v25 = vld [vmem:[%s1255_s2] ss:$0 sm:$0xff]  ;;  %s992_s6 = scalar_lea.hbm %s1256_s3, 4096 }
  0x16   : > { %v392_v4 = vsel %vm390_vm0, 4294967295, %v1052_v3  ;;  %s707_s4 = sshll.u32 %s1267_s30, 2  ;;  %s988_s30 = scalar_lea.hbm %s987_s29, 128 }
  0x17   : > { %v393_v5 = vsel %vm391_vm1, %v392_v4, 0  ;;  %s207_s7 = scalar_lea.vmem %s1253_s0, %s707_s4  ;;  %p989_p12 = scmp.ne.s32.totalorder %s987_s29, %s988_s30 }
  0x18   : > { %v395_v6 = vand.u32 %v775_v2, %v393_v5  ;;  %v797_v7 = vld [vmem:[%s207_s7] sm:$0xff]  ;;  %v798_v11 = vld [vmem:[%s207_s7 + $0x8] sm:$0xff]  ;;  %v799_v15 = vld [vmem:[%s207_s7 + $0x10] sm:$0xff]  ;;  %p994_p2 = scmp.lt.s32.totalorder %s992_s6, %s988_s30 }
  0x19   : > { %v801_v8 = vld [vmem:[%s207_s7 + $0x20] sm:$0xff]  ;;  %v802_v12 = vld [vmem:[%s207_s7 + $0x28] sm:$0xff]  ;;  %v803_v16 = vld [vmem:[%s207_s7 + $0x30] sm:$0xff]  ;;  %p990_p13 = pnand %p989_p12, %p1115_p4 }
  0x1a   : > { %404 = vmatpush.bf16.msra.mxu0 %v395_v6  ;;  %910 = vmatpush.bf16.msra.mxu1 %v395_v6  ;;  %v805_v9 = vld [vmem:[%s207_s7 + $0x40] sm:$0xff]  ;;  %v806_v13 = vld [vmem:[%s207_s7 + $0x48] sm:$0xff]  ;;  %v807_v17 = vld [vmem:[%s207_s7 + $0x50] sm:$0xff]  ;;  %p995_p3 = por %p994_p2, %p993_p1 }
  0x1b   : > { %911 = vmatpush.bf16.msra.mxu2 %v395_v6  ;;  %912 = vmatpush.bf16.msra.mxu3 %v395_v6  ;;  %v809_v10 = vld [vmem:[%s207_s7 + $0x60] sm:$0xff]  ;;  %v810_v14 = vld [vmem:[%s207_s7 + $0x68] sm:$0xff]  ;;  %v811_v18 = vld [vmem:[%s207_s7 + $0x70] sm:$0xff]  ;;  %p991_p0 = pneg %p990_p13 }
  0x1c   : > { %v800_v19 = vld [vmem:[%s207_s7 + $0x18] sm:$0xff] }
  0x1d   : > { %776 = vmatmul.msk.bf16.vlgmr.msra.gmra.mxu0 %vm341_vm2, %v797_v7  ;;  %780 = vmatmul.msk.bf16.vlgmr.msra.gmra.mxu1 %vm341_vm2, %v801_v8  ;;  %v804_v20 = vld [vmem:[%s207_s7 + $0x38] sm:$0xff]  ;;  %p996_p5 = pnand %p995_p3, %p991_p0 }
  0x1e   : > { %784 = vmatmul.msk.bf16.vlgmr.msra.gmra.mxu2 %vm341_vm2, %v805_v9  ;;  %788 = vmatmul.msk.bf16.vlgmr.msra.gmra.mxu3 %vm341_vm2, %v809_v10  ;;  %v808_v21 = vld [vmem:[%s207_s7 + $0x58] sm:$0xff] }
  0x1f   : > { %v812_v22 = vld [vmem:[%s207_s7 + $0x78] sm:$0xff] }
  0x2d   : > { %777 = vmatmul.msk.bf16.gmra.mxu0 %vm341_vm2, %v798_v11  ;;  %781 = vmatmul.msk.bf16.gmra.mxu1 %vm341_vm2, %v802_v12 }
  0x2e   : > { %785 = vmatmul.msk.bf16.gmra.mxu2 %vm341_vm2, %v806_v13  ;;  %789 = vmatmul.msk.bf16.gmra.mxu3 %vm341_vm2, %v810_v14 }
  0x3d   : > { %778 = vmatmul.msk.bf16.gmra.mxu0 %vm341_vm2, %v799_v15  ;;  %782 = vmatmul.msk.bf16.gmra.mxu1 %vm341_vm2, %v803_v16 }
  0x3e   : > { %786 = vmatmul.msk.bf16.gmra.mxu2 %vm341_vm2, %v807_v17  ;;  %790 = vmatmul.msk.bf16.gmra.mxu3 %vm341_vm2, %v811_v18 }
  0x4d   : > { %779 = vmatmul.msk.bf16.gmra.mxu0 %vm341_vm2, %v800_v19  ;;  %783 = vmatmul.msk.bf16.gmra.mxu1 %vm341_vm2, %v804_v20 }
  0x4e   : > { %787 = vmatmul.msk.bf16.gmra.mxu2 %vm341_vm2, %v808_v21  ;;  %791 = vmatmul.msk.bf16.gmra.mxu3 %vm341_vm2, %v812_v22 }
  0x9a   : > { %v406_v23 = vpop.f32.mrf.mxu0  ;;  %v426_v24 = vpop.f32.mrf.mxu1 }
  0x9b   : > { %v407_v26 = vadd.f32 %v1159_v25, %v406_v23  ;;  %v427_v27 = vadd.f32 %v1159_v25, %v426_v24 }
  0x9d   : > { %v486_v34 = vmax.f32 %v407_v26, 0.0  ;;  %v494_v35 = vmax.f32 %v427_v27, 0.0 }
  0xa1   : > { %v446_v28 = vpop.f32.mrf.mxu2  ;;  %v466_v29 = vpop.f32.mrf.mxu3 }
  0xa2   : > { %v408_v30 = vpop.f32.mrf.mxu0  ;;  %v428_v31 = vpop.f32.mrf.mxu1  ;;  %v447_v40 = vadd.f32 %v1159_v25, %v446_v28  ;;  %v467_v41 = vadd.f32 %v1159_v25, %v466_v29 }
  0xa3   : > { %v409_v32 = vadd.f32 %v1159_v25, %v408_v30  ;;  %v429_v33 = vadd.f32 %v1159_v25, %v428_v31 }
  0xa4   : > { %v502_v48 = vmax.f32 %v447_v40, 0.0  ;;  %v510_v49 = vmax.f32 %v467_v41, 0.0 }
  0xa5   : > { %v487_v36 = vmax.f32 %v409_v32, 0.0  ;;  %v495_v37 = vmax.f32 %v429_v33, 0.0 }
  0xa7   : > { %v818_v38 = vpack.c.bf16 %v487_v36, %v486_v34  ;;  %v838_v39 = vpack.c.bf16 %v495_v37, %v494_v35 }
  0xa9   : > { %819 = vst [vmem:[%s1170_s18] sm:$0xff] %v818_v38   ;;  %v448_v42 = vpop.f32.mrf.mxu2  ;;  %v468_v43 = vpop.f32.mrf.mxu3 }
  0xaa   : > { %898 = vst [vmem:[%s1170_s18 + $0x20] sm:$0xff] %v838_v39   ;;  %v449_v44 = vadd.f32 %v1159_v25, %v448_v42  ;;  %v469_v45 = vadd.f32 %v1159_v25, %v468_v43  ;;  %v411_v46 = vpop.f32.mrf.mxu0  ;;  %v431_v47 = vpop.f32.mrf.mxu1 }
  0xab   : > { %v412_v54 = vadd.f32 %v1159_v25, %v411_v46  ;;  %v432_v55 = vadd.f32 %v1159_v25, %v431_v47 }
  0xac   : > { %v503_v50 = vmax.f32 %v449_v44, 0.0  ;;  %v511_v51 = vmax.f32 %v469_v45, 0.0 }
  0xad   : > { %v488_v62 = vmax.f32 %v412_v54, 0.0  ;;  %v496_v63 = vmax.f32 %v432_v55, 0.0 }
  0xae   : > { %v858_v52 = vpack.c.bf16 %v503_v50, %v502_v48  ;;  %v878_v53 = vpack.c.bf16 %v511_v51, %v510_v49 }
  0xb0   : > { %902 = vst [vmem:[%s1170_s18 + $0x40] sm:$0xff] %v858_v52  }
  0xb1   : > { %906 = vst [vmem:[%s1170_s18 + $0x60] sm:$0xff] %v878_v53   ;;  %v451_v56 = vpop.f32.mrf.mxu2  ;;  %v471_v57 = vpop.f32.mrf.mxu3 }
  0xb2   : > { %v413_v58 = vpop.f32.mrf.mxu0  ;;  %v433_v59 = vpop.f32.mrf.mxu1  ;;  %v452_v4 = vadd.f32 %v1159_v25, %v451_v56  ;;  %v472_v5 = vadd.f32 %v1159_v25, %v471_v57 }
  0xb3   : > { %v414_v60 = vadd.f32 %v1159_v25, %v413_v58  ;;  %v434_v61 = vadd.f32 %v1159_v25, %v433_v59 }
  0xb4   : > { %v504_v12 = vmax.f32 %v452_v4, 0.0  ;;  %v512_v13 = vmax.f32 %v472_v5, 0.0 }
  0xb5   : > { %v489_v0 = vmax.f32 %v414_v60, 0.0  ;;  %v497_v1 = vmax.f32 %v434_v61, 0.0 }
  0xb7   : > { %v823_v2 = vpack.c.bf16 %v489_v0, %v488_v62  ;;  %v843_v3 = vpack.c.bf16 %v497_v1, %v496_v63 }
  0xb9   : > { %895 = vst [vmem:[%s1170_s18 + $0x8] sm:$0xff] %v823_v2   ;;  %v453_v6 = vpop.f32.mrf.mxu2  ;;  %v473_v7 = vpop.f32.mrf.mxu3 }
  0xba   : > { %899 = vst [vmem:[%s1170_s18 + $0x28] sm:$0xff] %v843_v3   ;;  %v454_v8 = vadd.f32 %v1159_v25, %v453_v6  ;;  %v474_v9 = vadd.f32 %v1159_v25, %v473_v7  ;;  %v416_v10 = vpop.f32.mrf.mxu0  ;;  %v436_v11 = vpop.f32.mrf.mxu1 }
  0xbb   : > { %v417_v18 = vadd.f32 %v1159_v25, %v416_v10  ;;  %v437_v19 = vadd.f32 %v1159_v25, %v436_v11 }
  0xbc   : > { %v505_v14 = vmax.f32 %v454_v8, 0.0  ;;  %v513_v15 = vmax.f32 %v474_v9, 0.0 }
  0xbd   : > { %v490_v27 = vmax.f32 %v417_v18, 0.0  ;;  %v498_v28 = vmax.f32 %v437_v19, 0.0 }
  0xbe   : > { %v863_v16 = vpack.c.bf16 %v505_v14, %v504_v12  ;;  %v883_v17 = vpack.c.bf16 %v513_v15, %v512_v13 }
  0xc0   : > { %903 = vst [vmem:[%s1170_s18 + $0x48] sm:$0xff] %v863_v16  }
  0xc1   : > { %907 = vst [vmem:[%s1170_s18 + $0x68] sm:$0xff] %v883_v17   ;;  %v456_v20 = vpop.f32.mrf.mxu2  ;;  %v476_v21 = vpop.f32.mrf.mxu3 }
  0xc2   : > { %v418_v22 = vpop.f32.mrf.mxu0  ;;  %v438_v23 = vpop.f32.mrf.mxu1  ;;  %v457_v33 = vadd.f32 %v1159_v25, %v456_v20  ;;  %v477_v34 = vadd.f32 %v1159_v25, %v476_v21 }
  0xc3   : > { %v419_v24 = vadd.f32 %v1159_v25, %v418_v22  ;;  %v439_v26 = vadd.f32 %v1159_v25, %v438_v23 }
  0xc4   : > { %v506_v41 = vmax.f32 %v457_v33, 0.0  ;;  %v514_v42 = vmax.f32 %v477_v34, 0.0 }
  0xc5   : > { %v491_v29 = vmax.f32 %v419_v24, 0.0  ;;  %v499_v30 = vmax.f32 %v439_v26, 0.0 }
  0xc7   : > { %v828_v31 = vpack.c.bf16 %v491_v29, %v490_v27  ;;  %v848_v32 = vpack.c.bf16 %v499_v30, %v498_v28 }
  0xc9   : > { %896 = vst [vmem:[%s1170_s18 + $0x10] sm:$0xff] %v828_v31   ;;  %v458_v35 = vpop.f32.mrf.mxu2  ;;  %v478_v36 = vpop.f32.mrf.mxu3 }
  0xca   : > { %900 = vst [vmem:[%s1170_s18 + $0x30] sm:$0xff] %v848_v32   ;;  %v459_v37 = vadd.f32 %v1159_v25, %v458_v35  ;;  %v479_v38 = vadd.f32 %v1159_v25, %v478_v36  ;;  %v421_v39 = vpop.f32.mrf.mxu0  ;;  %v441_v40 = vpop.f32.mrf.mxu1 }
  0xcb   : > { %v422_v47 = vadd.f32 %v1159_v25, %v421_v39  ;;  %v442_v48 = vadd.f32 %v1159_v25, %v441_v40 }
  0xcc   : > { %v507_v43 = vmax.f32 %v459_v37, 0.0  ;;  %v515_v44 = vmax.f32 %v479_v38, 0.0 }
  0xcd   : > { %v492_v55 = vmax.f32 %v422_v47, 0.0  ;;  %v500_v56 = vmax.f32 %v442_v48, 0.0 }
  0xce   : > { %v868_v45 = vpack.c.bf16 %v507_v43, %v506_v41  ;;  %v888_v46 = vpack.c.bf16 %v515_v44, %v514_v42 }
  0xd0   : > { %904 = vst [vmem:[%s1170_s18 + $0x50] sm:$0xff] %v868_v45  }
  0xd1   : > { %908 = vst [vmem:[%s1170_s18 + $0x70] sm:$0xff] %v888_v46   ;;  %v461_v49 = vpop.f32.mrf.mxu2  ;;  %v481_v50 = vpop.f32.mrf.mxu3 }
  0xd2   : > { %v423_v51 = vpop.f32.mrf.mxu0  ;;  %v443_v52 = vpop.f32.mrf.mxu1  ;;  %v462_v61 = vadd.f32 %v1159_v25, %v461_v49  ;;  %v482_v62 = vadd.f32 %v1159_v25, %v481_v50 }
  0xd3   : > { %v424_v53 = vadd.f32 %v1159_v25, %v423_v51  ;;  %v444_v54 = vadd.f32 %v1159_v25, %v443_v52 }
  0xd4   : > { %v508_v3 = vmax.f32 %v462_v61, 0.0  ;;  %v516_v4 = vmax.f32 %v482_v62, 0.0 }
  0xd5   : > { %v493_v57 = vmax.f32 %v424_v53, 0.0  ;;  %v501_v58 = vmax.f32 %v444_v54, 0.0 }
  0xd7   : > { %v833_v59 = vpack.c.bf16 %v493_v57, %v492_v55  ;;  %v853_v60 = vpack.c.bf16 %v501_v58, %v500_v56 }
  0xd9   : > { %897 = vst [vmem:[%s1170_s18 + $0x18] sm:$0xff] %v833_v59   ;;  %v463_v63 = vpop.f32.mrf.mxu2  ;;  %v483_v0 = vpop.f32.mrf.mxu3 }
  0xda   : > { %901 = vst [vmem:[%s1170_s18 + $0x38] sm:$0xff] %v853_v60   ;;  %v464_v1 = vadd.f32 %v1159_v25, %v463_v63  ;;  %v484_v2 = vadd.f32 %v1159_v25, %v483_v0 }
  0xdc   : > { %v509_v5 = vmax.f32 %v464_v1, 0.0  ;;  %v517_v6 = vmax.f32 %v484_v2, 0.0 }
  0xde   : > { %v873_v7 = vpack.c.bf16 %v509_v5, %v508_v3  ;;  %v893_v8 = vpack.c.bf16 %v517_v6, %v516_v4 }
  0xe0   : > { %905 = vst [vmem:[%s1170_s18 + $0x58] sm:$0xff] %v873_v7  }
  0xe1   : > { %909 = vst [vmem:[%s1170_s18 + $0x78] sm:$0xff] %v893_v8  }
  0xe2   : > { %999 = shalt.err (!%p996_p5)
}
  0xe3   : > { %s1053_s9 = smov 64   ;;  %s1054_s10 = smov 4  }
  0xe4   : > { %913 = dma.vmem_to_hbm [thread:$0]  (%p1115_p4), %s597_s15, 2048, %s599_s27, %s583_s28, %s1053_s9, %s1053_s9, %s1054_s10  }
  0xe5 PF: > { %p919_p6 = scmp.ge.s32.totalorder %s1050_s17, 2  ;;  %s613_s11 = sand.u32 1, %s1030_s12  }
  0xe6   : > { %s614_s18 = scalar_lea.sflag [#allocation3], %s613_s11 }
  0xe7   : > { %p916_p7 = pnand %p919_p6, %p1122_p8 }
  0xe9   : > { %p917_p9 = pneg %p916_p7 }
  0xeb   : > { %1025 = dma.done.wait (%p917_p9), %s614_s18, 2048  }
  0xec   : > { %1027 = vsyncadd (%p917_p9), %s614_s18, 4294965248  ;;  %s16_s17 = sadd.s32 1, %s1050_s17   ;;  %s1259_s12 = smov %s1034_s13 }
  0xed   : > { %p13_p10 = scmp.ge.s32.totalorder %s16_s17, 34   ;;  %s1260_s13 = smov %s1038_s14 }
  0xee   : > { %s1261_s14 = smov %s1128_s25  ;;  %s1262_s15 = smov %s1046_s16 }
  0xef   : > { %s1263_s16 = smov %s1265_s20  ;;  %15 = sbr.rel (!%p13_p10) target bundleno = 4 (0x4), region = 73 }
  0xf4   :  { %620 = vsyncpa [#allocation3], 1 }
  0xf5   :  { %622 = vsyncpa [#allocation3 + $0x1], 1 }

</bundles_post_ra>
